<compile_context>
chip_gen: v7x
topology: tpu7x:2x2x1
jax: 0.10.0
libtpu: 0.0.40
codegen_flags: <defaults>
</compile_context>

<pallas_src>
import functools
import math

import numpy as np
import jax
import jax.numpy as jnp
from jax.experimental import pallas as pl
from jax.experimental.pallas import tpu as pltpu


def _lane_roll(a, shift):
    """Circular shift along the last (lane) axis: result[:, i] = a[:, (i - shift) % L].

    Same semantics as jnp.roll(a, shift, axis=-1); written as two lane slices
    + a minor-dim concatenate, which Mosaic lowers to XLU lane rotates.
    """
    L = a.shape[-1]
    s = shift % L
    if s == 0:
        return a
    return jnp.concatenate([a[:, L - s:], a[:, :L - s]], axis=-1)


def _residual_block_kernel(x_ref, w_ref, b_ref, m_ref, o_ref, *, W):
    # x_ref/o_ref: (BC, HW)      BC = block_n * C, lane axis = H*W
    # w_ref:       (18, BC, BC)  block-diagonal per-tap weights, conv*9 + t
    # b_ref:       (2, BC, 1)    per-conv bias tiled over the image block
    # m_ref:       (9, 1, HW)    0/1 boundary masks per tap (host precomputed)
    BC, HW = x_ref.shape

    def conv3x3(act, conv):
        # act: (BC, HW) f32, already ReLU'd conv input.
        # Bias broadcast once per conv per grid step (not per image).
        acc = jnp.broadcast_to(b_ref[conv], (BC, HW)).astype(jnp.float32)
        for t in range(9):                      # static 9-tap unroll
            dh, dw = t // 3 - 1, t % 3 - 1
            off = dh * W + dw                   # flat lane offset of this tap
            if off == 0:
                tap = act
            else:
                # lane rotate (XLU) + boundary mask (VPU); wrapped lanes are
                # exactly the out-of-bounds pixels, zeroed by the mask.
                tap = _lane_roll(act, -off) * m_ref[t]
            # One weight-stationary MXU matmul per tap covers every image in
            # the block (block-diagonal weight), accumulated in f32.
            acc = acc + jnp.dot(w_ref[conv * 9 + t], tap,
                                preferred_element_type=jnp.float32)
        return acc

    h = conv3x3(jnp.maximum(x_ref[...].astype(jnp.float32), 0.0), 0)
    y = conv3x3(jnp.maximum(h, 0.0), 1)
    # Residual uses pre-ReLU x; re-read from VMEM rather than keeping it live
    # in vregs across both convs.  Single unmasked full-slab store.
    o_ref[...] = (y + x_ref[...].astype(jnp.float32)).astype(o_ref.dtype)


def _choose_block_n(N, C, target_rows=64):
    """Images per grid step.

    * (block_n*C) % 8 == 0 unless the block covers the whole batch (sublane
      alignment of the (block_n*C, HW) block).
    * ~target_rows rows/step: amortizes per-step pipeline overhead without
      inflating the block-diagonal weight (VMEM + wasted MXU K grow with it).
    * >= 2 grid steps when the batch allows it, so both v7x TensorCores get
      work; on single-TC v5e/v6e the extra step costs ~0.35us only.
    """
    base = math.lcm(8, C) // C          # smallest aligned block_n
    if N <= base:
        return N                        # whole (tiny) batch, single step
    b = base * max(1, target_rows // (base * C))
    max_b = max(base, (N // 2) // base * base)   # keep >= 2 steps
    return max(base, min(b, max_b))


def residual_block_pallas(x_nchw, w1_oihw, b1, w2_oihw, b2, *, block_n=None):
    """IMPALA ResidualBlock forward.  x is NCHW, weights are OIHW (PyTorch)."""
    N, C, H, W = x_nchw.shape
    HW = H * W

    if block_n is None:
        block_n = _choose_block_n(N, C)
    block_n = max(1, min(block_n, N))
    BC = block_n * C

    # Pad the batch (instead of degrading to block_n=1) when N isn't a
    # multiple of block_n; padded rows are zeros and sliced off afterwards.
    n_pad = (-N) % block_n
    N_pad = N + n_pad

    x2 = x_nchw.reshape(N * C, HW)           # free, contiguous reshape
    if n_pad:
        x2 = jnp.pad(x2, ((0, n_pad * C), (0, 0)))

    # ---- host-side constant packing (layout plumbing, done once) ----------
    def block_diag_taps(w_oihw):
        # OIHW (C,C,3,3) -> (9, C, C) with [t, co, ci], t = kh*3 + kw,
        # then block-diagonal over the image block -> (9, BC, BC).
        wt = jnp.transpose(w_oihw.astype(jnp.float32), (2, 3, 0, 1)).reshape(9, C, C)
        eye = jnp.eye(block_n, dtype=jnp.float32)
        return jnp.einsum('nm,tab->tnamb', eye, wt).reshape(9, BC, BC)

    w_all = jnp.concatenate([block_diag_taps(w1_oihw),
                             block_diag_taps(w2_oihw)], axis=0)      # (18,BC,BC)
    b_all = jnp.stack([jnp.tile(b1.astype(jnp.float32), block_n),
                       jnp.tile(b2.astype(jnp.float32), block_n)]
                      ).reshape(2, BC, 1)                            # (2,BC,1)

    # 0/1 boundary masks per tap; depend only on (H, W), so build on host.
    ph, pw = np.divmod(np.arange(HW), W)
    masks = np.ones((9, 1, HW), np.float32)
    for t in range(9):
        dh, dw = t // 3 - 1, t % 3 - 1
        masks[t, 0] = ((ph + dh >= 0) & (ph + dh < H) &
                       (pw + dw >= 0) & (pw + dw < W))
    masks = jnp.asarray(masks)

    kernel = functools.partial(_residual_block_kernel, W=W)

    out2 = pl.pallas_call(
        kernel,
        out_shape=jax.ShapeDtypeStruct((N_pad * C, HW), x_nchw.dtype),
        grid=(N_pad // block_n,),
        in_specs=[
            pl.BlockSpec((BC, HW), lambda g: (g, 0)),
            pl.BlockSpec((18, BC, BC), lambda g: (0, 0, 0)),
            pl.BlockSpec((2, BC, 1), lambda g: (0, 0, 0)),
            pl.BlockSpec((9, 1, HW), lambda g: (0, 0, 0)),
        ],
        out_specs=pl.BlockSpec((BC, HW), lambda g: (g, 0)),
        compiler_params=pltpu.CompilerParams(
            dimension_semantics=("parallel",)),
    )(x2, w_all, b_all, masks)

    return out2[:N * C].reshape(N, C, H, W)


def residual_block_ref(x_nchw, w1, b1, w2, b2):
    # Pure-JAX reference matching the PyTorch module (NCHW, OIHW weights).
    def conv(x, w, b):
        y = jax.lax.conv_general_dilated(
            x, w, window_strides=(1, 1), padding=((1, 1), (1, 1)),
            dimension_numbers=("NCHW", "OIHW", "NCHW"))
        return y + b[None, :, None, None]

    out = jax.nn.relu(x_nchw)
    out = conv(out, w1, b1)
    out = jax.nn.relu(out)
    out = conv(out, w2, b2)
    return out + x_nchw


if __name__ == "__main__":
    key = jax.random.PRNGKey(0)
    k_x, k_w1, k_b1, k_w2, k_b2 = jax.random.split(key, 5)

    N, C, H, W = 2, 4, 16, 16          # small shapes; in_channels = 4

    # Deterministic synthetic parameters (PyTorch conv shapes: OIHW + bias).
    fan_in = C * 3 * 3
    bound = 1.0 / np.sqrt(fan_in)
    x_nchw = jax.random.normal(k_x, (N, C, H, W), dtype=jnp.float32)
    w1 = jax.random.uniform(k_w1, (C, C, 3, 3), jnp.float32, -bound, bound)
    b1 = jax.random.uniform(k_b1, (C,), jnp.float32, -bound, bound)
    w2 = jax.random.uniform(k_w2, (C, C, 3, 3), jnp.float32, -bound, bound)
    b2 = jax.random.uniform(k_b2, (C,), jnp.float32, -bound, bound)

    out = residual_block_pallas(x_nchw, w1, b1, w2, b2)
    jax.block_until_ready(out)

    ref = residual_block_ref(x_nchw, w1, b1, w2, b2)
    np.testing.assert_allclose(np.asarray(out), np.asarray(ref),
                               rtol=1e-5, atol=1e-5)
    print("KERNEL_OK")
</pallas_src>

<mosaic_0001>
module attributes {stable_mosaic.version = 11 : i64} {
  func.func @_residual_block_kernel(%arg0: i32, %arg1: memref<8x256xf32, #tpu.memory_space<vmem>>, %arg2: memref<18x8x8xf32, #tpu.memory_space<vmem>>, %arg3: memref<2x8x1xf32, #tpu.memory_space<vmem>>, %arg4: memref<9x1x256xf32, #tpu.memory_space<vmem>>, %arg5: memref<8x256xf32, #tpu.memory_space<vmem>>) attributes {dimension_semantics = [#tpu.dimension_semantics<parallel>], iteration_bounds = array<i64: 1>, scalar_prefetch = 0 : i64, scratch_operands = 0 : i64, tpu.core_type = #tpu.core_type<tc>, window_params = [{transform_indices = @transform_0, window_bounds = array<i64: 8, 256>}, {pipeline_mode = #tpu.pipeline_mode<synchronous>, transform_indices = @transform_1, window_bounds = array<i64: 18, 8, 8>}, {pipeline_mode = #tpu.pipeline_mode<synchronous>, transform_indices = @transform_2, window_bounds = array<i64: 2, 8, 1>}, {pipeline_mode = #tpu.pipeline_mode<synchronous>, transform_indices = @transform_3, window_bounds = array<i64: 9, 1, 256>}, {transform_indices = @transform_4, window_bounds = array<i64: 8, 256>}]} {
    %c0 = arith.constant 0 : index
    %c0_0 = arith.constant 0 : index
    %0 = vector.load %arg1[%c0, %c0_0] : memref<8x256xf32, #tpu.memory_space<vmem>>, vector<8x256xf32>
    %cst = arith.constant 0.000000e+00 : f32
    %1 = vector.broadcast %cst : f32 to vector<8x256xf32>
    %2 = arith.maximumf %0, %1 : vector<8x256xf32>
    %c0_1 = arith.constant 0 : index
    %c0_2 = arith.constant 0 : index
    %c0_3 = arith.constant 0 : index
    %3 = vector.load %arg3[%c0_1, %c0_2, %c0_3] : memref<2x8x1xf32, #tpu.memory_space<vmem>>, vector<1x8x1xf32>
    %4 = vector.shape_cast %3 : vector<1x8x1xf32> to vector<8x1xf32>
    %5 = vector.shape_cast %4 : vector<8x1xf32> to vector<8x1xf32>
    %6 = vector.broadcast %5 : vector<8x1xf32> to vector<8x256xf32>
    %7 = vector.extract_strided_slice %2 {offsets = [0, 239], sizes = [8, 17], strides = [1, 1]} : vector<8x256xf32> to vector<8x17xf32>
    %8 = vector.extract_strided_slice %2 {offsets = [0, 0], sizes = [8, 239], strides = [1, 1]} : vector<8x256xf32> to vector<8x239xf32>
    %9 = tpu.concatenate %7, %8 in 1 : vector<8x17xf32>, vector<8x239xf32> -> vector<8x256xf32>
    %c0_4 = arith.constant 0 : index
    %c0_5 = arith.constant 0 : index
    %c0_6 = arith.constant 0 : index
    %10 = vector.load %arg4[%c0_4, %c0_5, %c0_6] : memref<9x1x256xf32, #tpu.memory_space<vmem>>, vector<1x1x256xf32>
    %11 = vector.shape_cast %10 : vector<1x1x256xf32> to vector<1x256xf32>
    %12 = vector.broadcast %11 : vector<1x256xf32> to vector<8x256xf32>
    %13 = arith.mulf %9, %12 : vector<8x256xf32>
    %c0_7 = arith.constant 0 : index
    %c0_8 = arith.constant 0 : index
    %c0_9 = arith.constant 0 : index
    %14 = vector.load %arg2[%c0_7, %c0_8, %c0_9] : memref<18x8x8xf32, #tpu.memory_space<vmem>>, vector<1x8x8xf32>
    %15 = vector.shape_cast %14 : vector<1x8x8xf32> to vector<8x8xf32>
    %cst_10 = arith.constant dense<0.000000e+00> : vector<8x256xf32>
    %16 = tpu.matmul %15, %13, %cst_10 {dimension_numbers = #tpu.dot_dimension_numbers<[1], [0], [0], [1], [0, 0, 1, 1], [], []>} : vector<8x8xf32>, vector<8x256xf32>, vector<8x256xf32> -> vector<8x256xf32>
    %17 = arith.addf %6, %16 : vector<8x256xf32>
    %18 = vector.extract_strided_slice %2 {offsets = [0, 240], sizes = [8, 16], strides = [1, 1]} : vector<8x256xf32> to vector<8x16xf32>
    %19 = vector.extract_strided_slice %2 {offsets = [0, 0], sizes = [8, 240], strides = [1, 1]} : vector<8x256xf32> to vector<8x240xf32>
    %20 = tpu.concatenate %18, %19 in 1 : vector<8x16xf32>, vector<8x240xf32> -> vector<8x256xf32>
    %c1 = arith.constant 1 : index
    %c0_11 = arith.constant 0 : index
    %c0_12 = arith.constant 0 : index
    %21 = vector.load %arg4[%c1, %c0_11, %c0_12] : memref<9x1x256xf32, #tpu.memory_space<vmem>>, vector<1x1x256xf32>
    %22 = vector.shape_cast %21 : vector<1x1x256xf32> to vector<1x256xf32>
    %23 = vector.broadcast %22 : vector<1x256xf32> to vector<8x256xf32>
    %24 = arith.mulf %20, %23 : vector<8x256xf32>
    %c1_13 = arith.constant 1 : index
    %c0_14 = arith.constant 0 : index
    %c0_15 = arith.constant 0 : index
    %25 = vector.load %arg2[%c1_13, %c0_14, %c0_15] : memref<18x8x8xf32, #tpu.memory_space<vmem>>, vector<1x8x8xf32>
    %26 = vector.shape_cast %25 : vector<1x8x8xf32> to vector<8x8xf32>
    %cst_16 = arith.constant dense<0.000000e+00> : vector<8x256xf32>
    %27 = tpu.matmul %26, %24, %cst_16 {dimension_numbers = #tpu.dot_dimension_numbers<[1], [0], [0], [1], [0, 0, 1, 1], [], []>} : vector<8x8xf32>, vector<8x256xf32>, vector<8x256xf32> -> vector<8x256xf32>
    %28 = arith.addf %17, %27 : vector<8x256xf32>
    %29 = vector.extract_strided_slice %2 {offsets = [0, 241], sizes = [8, 15], strides = [1, 1]} : vector<8x256xf32> to vector<8x15xf32>
    %30 = vector.extract_strided_slice %2 {offsets = [0, 0], sizes = [8, 241], strides = [1, 1]} : vector<8x256xf32> to vector<8x241xf32>
    %31 = tpu.concatenate %29, %30 in 1 : vector<8x15xf32>, vector<8x241xf32> -> vector<8x256xf32>
    %c2 = arith.constant 2 : index
    %c0_17 = arith.constant 0 : index
    %c0_18 = arith.constant 0 : index
    %32 = vector.load %arg4[%c2, %c0_17, %c0_18] : memref<9x1x256xf32, #tpu.memory_space<vmem>>, vector<1x1x256xf32>
    %33 = vector.shape_cast %32 : vector<1x1x256xf32> to vector<1x256xf32>
    %34 = vector.broadcast %33 : vector<1x256xf32> to vector<8x256xf32>
    %35 = arith.mulf %31, %34 : vector<8x256xf32>
    %c2_19 = arith.constant 2 : index
    %c0_20 = arith.constant 0 : index
    %c0_21 = arith.constant 0 : index
    %36 = vector.load %arg2[%c2_19, %c0_20, %c0_21] : memref<18x8x8xf32, #tpu.memory_space<vmem>>, vector<1x8x8xf32>
    %37 = vector.shape_cast %36 : vector<1x8x8xf32> to vector<8x8xf32>
    %cst_22 = arith.constant dense<0.000000e+00> : vector<8x256xf32>
    %38 = tpu.matmul %37, %35, %cst_22 {dimension_numbers = #tpu.dot_dimension_numbers<[1], [0], [0], [1], [0, 0, 1, 1], [], []>} : vector<8x8xf32>, vector<8x256xf32>, vector<8x256xf32> -> vector<8x256xf32>
    %39 = arith.addf %28, %38 : vector<8x256xf32>
    %40 = vector.extract_strided_slice %2 {offsets = [0, 255], sizes = [8, 1], strides = [1, 1]} : vector<8x256xf32> to vector<8x1xf32>
    %41 = vector.extract_strided_slice %2 {offsets = [0, 0], sizes = [8, 255], strides = [1, 1]} : vector<8x256xf32> to vector<8x255xf32>
    %42 = tpu.concatenate %40, %41 in 1 : vector<8x1xf32>, vector<8x255xf32> -> vector<8x256xf32>
    %c3 = arith.constant 3 : index
    %c0_23 = arith.constant 0 : index
    %c0_24 = arith.constant 0 : index
    %43 = vector.load %arg4[%c3, %c0_23, %c0_24] : memref<9x1x256xf32, #tpu.memory_space<vmem>>, vector<1x1x256xf32>
    %44 = vector.shape_cast %43 : vector<1x1x256xf32> to vector<1x256xf32>
    %45 = vector.broadcast %44 : vector<1x256xf32> to vector<8x256xf32>
    %46 = arith.mulf %42, %45 : vector<8x256xf32>
    %c3_25 = arith.constant 3 : index
    %c0_26 = arith.constant 0 : index
    %c0_27 = arith.constant 0 : index
    %47 = vector.load %arg2[%c3_25, %c0_26, %c0_27] : memref<18x8x8xf32, #tpu.memory_space<vmem>>, vector<1x8x8xf32>
    %48 = vector.shape_cast %47 : vector<1x8x8xf32> to vector<8x8xf32>
    %cst_28 = arith.constant dense<0.000000e+00> : vector<8x256xf32>
    %49 = tpu.matmul %48, %46, %cst_28 {dimension_numbers = #tpu.dot_dimension_numbers<[1], [0], [0], [1], [0, 0, 1, 1], [], []>} : vector<8x8xf32>, vector<8x256xf32>, vector<8x256xf32> -> vector<8x256xf32>
    %50 = arith.addf %39, %49 : vector<8x256xf32>
    %c4 = arith.constant 4 : index
    %c0_29 = arith.constant 0 : index
    %c0_30 = arith.constant 0 : index
    %51 = vector.load %arg2[%c4, %c0_29, %c0_30] : memref<18x8x8xf32, #tpu.memory_space<vmem>>, vector<1x8x8xf32>
    %52 = vector.shape_cast %51 : vector<1x8x8xf32> to vector<8x8xf32>
    %cst_31 = arith.constant dense<0.000000e+00> : vector<8x256xf32>
    %53 = tpu.matmul %52, %2, %cst_31 {dimension_numbers = #tpu.dot_dimension_numbers<[1], [0], [0], [1], [0, 0, 1, 1], [], []>} : vector<8x8xf32>, vector<8x256xf32>, vector<8x256xf32> -> vector<8x256xf32>
    %54 = arith.addf %50, %53 : vector<8x256xf32>
    %55 = vector.extract_strided_slice %2 {offsets = [0, 1], sizes = [8, 255], strides = [1, 1]} : vector<8x256xf32> to vector<8x255xf32>
    %56 = vector.extract_strided_slice %2 {offsets = [0, 0], sizes = [8, 1], strides = [1, 1]} : vector<8x256xf32> to vector<8x1xf32>
    %57 = tpu.concatenate %55, %56 in 1 : vector<8x255xf32>, vector<8x1xf32> -> vector<8x256xf32>
    %c5 = arith.constant 5 : index
    %c0_32 = arith.constant 0 : index
    %c0_33 = arith.constant 0 : index
    %58 = vector.load %arg4[%c5, %c0_32, %c0_33] : memref<9x1x256xf32, #tpu.memory_space<vmem>>, vector<1x1x256xf32>
    %59 = vector.shape_cast %58 : vector<1x1x256xf32> to vector<1x256xf32>
    %60 = vector.broadcast %59 : vector<1x256xf32> to vector<8x256xf32>
    %61 = arith.mulf %57, %60 : vector<8x256xf32>
    %c5_34 = arith.constant 5 : index
    %c0_35 = arith.constant 0 : index
    %c0_36 = arith.constant 0 : index
    %62 = vector.load %arg2[%c5_34, %c0_35, %c0_36] : memref<18x8x8xf32, #tpu.memory_space<vmem>>, vector<1x8x8xf32>
    %63 = vector.shape_cast %62 : vector<1x8x8xf32> to vector<8x8xf32>
    %cst_37 = arith.constant dense<0.000000e+00> : vector<8x256xf32>
    %64 = tpu.matmul %63, %61, %cst_37 {dimension_numbers = #tpu.dot_dimension_numbers<[1], [0], [0], [1], [0, 0, 1, 1], [], []>} : vector<8x8xf32>, vector<8x256xf32>, vector<8x256xf32> -> vector<8x256xf32>
    %65 = arith.addf %54, %64 : vector<8x256xf32>
    %66 = vector.extract_strided_slice %2 {offsets = [0, 15], sizes = [8, 241], strides = [1, 1]} : vector<8x256xf32> to vector<8x241xf32>
    %67 = vector.extract_strided_slice %2 {offsets = [0, 0], sizes = [8, 15], strides = [1, 1]} : vector<8x256xf32> to vector<8x15xf32>
    %68 = tpu.concatenate %66, %67 in 1 : vector<8x241xf32>, vector<8x15xf32> -> vector<8x256xf32>
    %c6 = arith.constant 6 : index
    %c0_38 = arith.constant 0 : index
    %c0_39 = arith.constant 0 : index
    %69 = vector.load %arg4[%c6, %c0_38, %c0_39] : memref<9x1x256xf32, #tpu.memory_space<vmem>>, vector<1x1x256xf32>
    %70 = vector.shape_cast %69 : vector<1x1x256xf32> to vector<1x256xf32>
    %71 = vector.broadcast %70 : vector<1x256xf32> to vector<8x256xf32>
    %72 = arith.mulf %68, %71 : vector<8x256xf32>
    %c6_40 = arith.constant 6 : index
    %c0_41 = arith.constant 0 : index
    %c0_42 = arith.constant 0 : index
    %73 = vector.load %arg2[%c6_40, %c0_41, %c0_42] : memref<18x8x8xf32, #tpu.memory_space<vmem>>, vector<1x8x8xf32>
    %74 = vector.shape_cast %73 : vector<1x8x8xf32> to vector<8x8xf32>
    %cst_43 = arith.constant dense<0.000000e+00> : vector<8x256xf32>
    %75 = tpu.matmul %74, %72, %cst_43 {dimension_numbers = #tpu.dot_dimension_numbers<[1], [0], [0], [1], [0, 0, 1, 1], [], []>} : vector<8x8xf32>, vector<8x256xf32>, vector<8x256xf32> -> vector<8x256xf32>
    %76 = arith.addf %65, %75 : vector<8x256xf32>
    %77 = vector.extract_strided_slice %2 {offsets = [0, 16], sizes = [8, 240], strides = [1, 1]} : vector<8x256xf32> to vector<8x240xf32>
    %78 = vector.extract_strided_slice %2 {offsets = [0, 0], sizes = [8, 16], strides = [1, 1]} : vector<8x256xf32> to vector<8x16xf32>
    %79 = tpu.concatenate %77, %78 in 1 : vector<8x240xf32>, vector<8x16xf32> -> vector<8x256xf32>
    %c7 = arith.constant 7 : index
    %c0_44 = arith.constant 0 : index
    %c0_45 = arith.constant 0 : index
    %80 = vector.load %arg4[%c7, %c0_44, %c0_45] : memref<9x1x256xf32, #tpu.memory_space<vmem>>, vector<1x1x256xf32>
    %81 = vector.shape_cast %80 : vector<1x1x256xf32> to vector<1x256xf32>
    %82 = vector.broadcast %81 : vector<1x256xf32> to vector<8x256xf32>
    %83 = arith.mulf %79, %82 : vector<8x256xf32>
    %c7_46 = arith.constant 7 : index
    %c0_47 = arith.constant 0 : index
    %c0_48 = arith.constant 0 : index
    %84 = vector.load %arg2[%c7_46, %c0_47, %c0_48] : memref<18x8x8xf32, #tpu.memory_space<vmem>>, vector<1x8x8xf32>
    %85 = vector.shape_cast %84 : vector<1x8x8xf32> to vector<8x8xf32>
    %cst_49 = arith.constant dense<0.000000e+00> : vector<8x256xf32>
    %86 = tpu.matmul %85, %83, %cst_49 {dimension_numbers = #tpu.dot_dimension_numbers<[1], [0], [0], [1], [0, 0, 1, 1], [], []>} : vector<8x8xf32>, vector<8x256xf32>, vector<8x256xf32> -> vector<8x256xf32>
    %87 = arith.addf %76, %86 : vector<8x256xf32>
    %88 = vector.extract_strided_slice %2 {offsets = [0, 17], sizes = [8, 239], strides = [1, 1]} : vector<8x256xf32> to vector<8x239xf32>
    %89 = vector.extract_strided_slice %2 {offsets = [0, 0], sizes = [8, 17], strides = [1, 1]} : vector<8x256xf32> to vector<8x17xf32>
    %90 = tpu.concatenate %88, %89 in 1 : vector<8x239xf32>, vector<8x17xf32> -> vector<8x256xf32>
    %c8 = arith.constant 8 : index
    %c0_50 = arith.constant 0 : index
    %c0_51 = arith.constant 0 : index
    %91 = vector.load %arg4[%c8, %c0_50, %c0_51] : memref<9x1x256xf32, #tpu.memory_space<vmem>>, vector<1x1x256xf32>
    %92 = vector.shape_cast %91 : vector<1x1x256xf32> to vector<1x256xf32>
    %93 = vector.broadcast %92 : vector<1x256xf32> to vector<8x256xf32>
    %94 = arith.mulf %90, %93 : vector<8x256xf32>
    %c8_52 = arith.constant 8 : index
    %c0_53 = arith.constant 0 : index
    %c0_54 = arith.constant 0 : index
    %95 = vector.load %arg2[%c8_52, %c0_53, %c0_54] : memref<18x8x8xf32, #tpu.memory_space<vmem>>, vector<1x8x8xf32>
    %96 = vector.shape_cast %95 : vector<1x8x8xf32> to vector<8x8xf32>
    %cst_55 = arith.constant dense<0.000000e+00> : vector<8x256xf32>
    %97 = tpu.matmul %96, %94, %cst_55 {dimension_numbers = #tpu.dot_dimension_numbers<[1], [0], [0], [1], [0, 0, 1, 1], [], []>} : vector<8x8xf32>, vector<8x256xf32>, vector<8x256xf32> -> vector<8x256xf32>
    %98 = arith.addf %87, %97 : vector<8x256xf32>
    %cst_56 = arith.constant 0.000000e+00 : f32
    %99 = vector.broadcast %cst_56 : f32 to vector<8x256xf32>
    %100 = arith.maximumf %98, %99 : vector<8x256xf32>
    %c1_57 = arith.constant 1 : index
    %c0_58 = arith.constant 0 : index
    %c0_59 = arith.constant 0 : index
    %101 = vector.load %arg3[%c1_57, %c0_58, %c0_59] : memref<2x8x1xf32, #tpu.memory_space<vmem>>, vector<1x8x1xf32>
    %102 = vector.shape_cast %101 : vector<1x8x1xf32> to vector<8x1xf32>
    %103 = vector.shape_cast %102 : vector<8x1xf32> to vector<8x1xf32>
    %104 = vector.broadcast %103 : vector<8x1xf32> to vector<8x256xf32>
    %105 = vector.extract_strided_slice %100 {offsets = [0, 239], sizes = [8, 17], strides = [1, 1]} : vector<8x256xf32> to vector<8x17xf32>
    %106 = vector.extract_strided_slice %100 {offsets = [0, 0], sizes = [8, 239], strides = [1, 1]} : vector<8x256xf32> to vector<8x239xf32>
    %107 = tpu.concatenate %105, %106 in 1 : vector<8x17xf32>, vector<8x239xf32> -> vector<8x256xf32>
    %c0_60 = arith.constant 0 : index
    %c0_61 = arith.constant 0 : index
    %c0_62 = arith.constant 0 : index
    %108 = vector.load %arg4[%c0_60, %c0_61, %c0_62] : memref<9x1x256xf32, #tpu.memory_space<vmem>>, vector<1x1x256xf32>
    %109 = vector.shape_cast %108 : vector<1x1x256xf32> to vector<1x256xf32>
    %110 = vector.broadcast %109 : vector<1x256xf32> to vector<8x256xf32>
    %111 = arith.mulf %107, %110 : vector<8x256xf32>
    %c9 = arith.constant 9 : index
    %c0_63 = arith.constant 0 : index
    %c0_64 = arith.constant 0 : index
    %112 = vector.load %arg2[%c9, %c0_63, %c0_64] : memref<18x8x8xf32, #tpu.memory_space<vmem>>, vector<1x8x8xf32>
    %113 = vector.shape_cast %112 : vector<1x8x8xf32> to vector<8x8xf32>
    %cst_65 = arith.constant dense<0.000000e+00> : vector<8x256xf32>
    %114 = tpu.matmul %113, %111, %cst_65 {dimension_numbers = #tpu.dot_dimension_numbers<[1], [0], [0], [1], [0, 0, 1, 1], [], []>} : vector<8x8xf32>, vector<8x256xf32>, vector<8x256xf32> -> vector<8x256xf32>
    %115 = arith.addf %104, %114 : vector<8x256xf32>
    %116 = vector.extract_strided_slice %100 {offsets = [0, 240], sizes = [8, 16], strides = [1, 1]} : vector<8x256xf32> to vector<8x16xf32>
    %117 = vector.extract_strided_slice %100 {offsets = [0, 0], sizes = [8, 240], strides = [1, 1]} : vector<8x256xf32> to vector<8x240xf32>
    %118 = tpu.concatenate %116, %117 in 1 : vector<8x16xf32>, vector<8x240xf32> -> vector<8x256xf32>
    %c1_66 = arith.constant 1 : index
    %c0_67 = arith.constant 0 : index
    %c0_68 = arith.constant 0 : index
    %119 = vector.load %arg4[%c1_66, %c0_67, %c0_68] : memref<9x1x256xf32, #tpu.memory_space<vmem>>, vector<1x1x256xf32>
    %120 = vector.shape_cast %119 : vector<1x1x256xf32> to vector<1x256xf32>
    %121 = vector.broadcast %120 : vector<1x256xf32> to vector<8x256xf32>
    %122 = arith.mulf %118, %121 : vector<8x256xf32>
    %c10 = arith.constant 10 : index
    %c0_69 = arith.constant 0 : index
    %c0_70 = arith.constant 0 : index
    %123 = vector.load %arg2[%c10, %c0_69, %c0_70] : memref<18x8x8xf32, #tpu.memory_space<vmem>>, vector<1x8x8xf32>
    %124 = vector.shape_cast %123 : vector<1x8x8xf32> to vector<8x8xf32>
    %cst_71 = arith.constant dense<0.000000e+00> : vector<8x256xf32>
    %125 = tpu.matmul %124, %122, %cst_71 {dimension_numbers = #tpu.dot_dimension_numbers<[1], [0], [0], [1], [0, 0, 1, 1], [], []>} : vector<8x8xf32>, vector<8x256xf32>, vector<8x256xf32> -> vector<8x256xf32>
    %126 = arith.addf %115, %125 : vector<8x256xf32>
    %127 = vector.extract_strided_slice %100 {offsets = [0, 241], sizes = [8, 15], strides = [1, 1]} : vector<8x256xf32> to vector<8x15xf32>
    %128 = vector.extract_strided_slice %100 {offsets = [0, 0], sizes = [8, 241], strides = [1, 1]} : vector<8x256xf32> to vector<8x241xf32>
    %129 = tpu.concatenate %127, %128 in 1 : vector<8x15xf32>, vector<8x241xf32> -> vector<8x256xf32>
    %c2_72 = arith.constant 2 : index
    %c0_73 = arith.constant 0 : index
    %c0_74 = arith.constant 0 : index
    %130 = vector.load %arg4[%c2_72, %c0_73, %c0_74] : memref<9x1x256xf32, #tpu.memory_space<vmem>>, vector<1x1x256xf32>
    %131 = vector.shape_cast %130 : vector<1x1x256xf32> to vector<1x256xf32>
    %132 = vector.broadcast %131 : vector<1x256xf32> to vector<8x256xf32>
    %133 = arith.mulf %129, %132 : vector<8x256xf32>
    %c11 = arith.constant 11 : index
    %c0_75 = arith.constant 0 : index
    %c0_76 = arith.constant 0 : index
    %134 = vector.load %arg2[%c11, %c0_75, %c0_76] : memref<18x8x8xf32, #tpu.memory_space<vmem>>, vector<1x8x8xf32>
    %135 = vector.shape_cast %134 : vector<1x8x8xf32> to vector<8x8xf32>
    %cst_77 = arith.constant dense<0.000000e+00> : vector<8x256xf32>
    %136 = tpu.matmul %135, %133, %cst_77 {dimension_numbers = #tpu.dot_dimension_numbers<[1], [0], [0], [1], [0, 0, 1, 1], [], []>} : vector<8x8xf32>, vector<8x256xf32>, vector<8x256xf32> -> vector<8x256xf32>
    %137 = arith.addf %126, %136 : vector<8x256xf32>
    %138 = vector.extract_strided_slice %100 {offsets = [0, 255], sizes = [8, 1], strides = [1, 1]} : vector<8x256xf32> to vector<8x1xf32>
    %139 = vector.extract_strided_slice %100 {offsets = [0, 0], sizes = [8, 255], strides = [1, 1]} : vector<8x256xf32> to vector<8x255xf32>
    %140 = tpu.concatenate %138, %139 in 1 : vector<8x1xf32>, vector<8x255xf32> -> vector<8x256xf32>
    %c3_78 = arith.constant 3 : index
    %c0_79 = arith.constant 0 : index
    %c0_80 = arith.constant 0 : index
    %141 = vector.load %arg4[%c3_78, %c0_79, %c0_80] : memref<9x1x256xf32, #tpu.memory_space<vmem>>, vector<1x1x256xf32>
    %142 = vector.shape_cast %141 : vector<1x1x256xf32> to vector<1x256xf32>
    %143 = vector.broadcast %142 : vector<1x256xf32> to vector<8x256xf32>
    %144 = arith.mulf %140, %143 : vector<8x256xf32>
    %c12 = arith.constant 12 : index
    %c0_81 = arith.constant 0 : index
    %c0_82 = arith.constant 0 : index
    %145 = vector.load %arg2[%c12, %c0_81, %c0_82] : memref<18x8x8xf32, #tpu.memory_space<vmem>>, vector<1x8x8xf32>
    %146 = vector.shape_cast %145 : vector<1x8x8xf32> to vector<8x8xf32>
    %cst_83 = arith.constant dense<0.000000e+00> : vector<8x256xf32>
    %147 = tpu.matmul %146, %144, %cst_83 {dimension_numbers = #tpu.dot_dimension_numbers<[1], [0], [0], [1], [0, 0, 1, 1], [], []>} : vector<8x8xf32>, vector<8x256xf32>, vector<8x256xf32> -> vector<8x256xf32>
    %148 = arith.addf %137, %147 : vector<8x256xf32>
    %c13 = arith.constant 13 : index
    %c0_84 = arith.constant 0 : index
    %c0_85 = arith.constant 0 : index
    %149 = vector.load %arg2[%c13, %c0_84, %c0_85] : memref<18x8x8xf32, #tpu.memory_space<vmem>>, vector<1x8x8xf32>
    %150 = vector.shape_cast %149 : vector<1x8x8xf32> to vector<8x8xf32>
    %cst_86 = arith.constant dense<0.000000e+00> : vector<8x256xf32>
    %151 = tpu.matmul %150, %100, %cst_86 {dimension_numbers = #tpu.dot_dimension_numbers<[1], [0], [0], [1], [0, 0, 1, 1], [], []>} : vector<8x8xf32>, vector<8x256xf32>, vector<8x256xf32> -> vector<8x256xf32>
    %152 = arith.addf %148, %151 : vector<8x256xf32>
    %153 = vector.extract_strided_slice %100 {offsets = [0, 1], sizes = [8, 255], strides = [1, 1]} : vector<8x256xf32> to vector<8x255xf32>
    %154 = vector.extract_strided_slice %100 {offsets = [0, 0], sizes = [8, 1], strides = [1, 1]} : vector<8x256xf32> to vector<8x1xf32>
    %155 = tpu.concatenate %153, %154 in 1 : vector<8x255xf32>, vector<8x1xf32> -> vector<8x256xf32>
    %c5_87 = arith.constant 5 : index
    %c0_88 = arith.constant 0 : index
    %c0_89 = arith.constant 0 : index
    %156 = vector.load %arg4[%c5_87, %c0_88, %c0_89] : memref<9x1x256xf32, #tpu.memory_space<vmem>>, vector<1x1x256xf32>
    %157 = vector.shape_cast %156 : vector<1x1x256xf32> to vector<1x256xf32>
    %158 = vector.broadcast %157 : vector<1x256xf32> to vector<8x256xf32>
    %159 = arith.mulf %155, %158 : vector<8x256xf32>
    %c14 = arith.constant 14 : index
    %c0_90 = arith.constant 0 : index
    %c0_91 = arith.constant 0 : index
    %160 = vector.load %arg2[%c14, %c0_90, %c0_91] : memref<18x8x8xf32, #tpu.memory_space<vmem>>, vector<1x8x8xf32>
    %161 = vector.shape_cast %160 : vector<1x8x8xf32> to vector<8x8xf32>
    %cst_92 = arith.constant dense<0.000000e+00> : vector<8x256xf32>
    %162 = tpu.matmul %161, %159, %cst_92 {dimension_numbers = #tpu.dot_dimension_numbers<[1], [0], [0], [1], [0, 0, 1, 1], [], []>} : vector<8x8xf32>, vector<8x256xf32>, vector<8x256xf32> -> vector<8x256xf32>
    %163 = arith.addf %152, %162 : vector<8x256xf32>
    %164 = vector.extract_strided_slice %100 {offsets = [0, 15], sizes = [8, 241], strides = [1, 1]} : vector<8x256xf32> to vector<8x241xf32>
    %165 = vector.extract_strided_slice %100 {offsets = [0, 0], sizes = [8, 15], strides = [1, 1]} : vector<8x256xf32> to vector<8x15xf32>
    %166 = tpu.concatenate %164, %165 in 1 : vector<8x241xf32>, vector<8x15xf32> -> vector<8x256xf32>
    %c6_93 = arith.constant 6 : index
    %c0_94 = arith.constant 0 : index
    %c0_95 = arith.constant 0 : index
    %167 = vector.load %arg4[%c6_93, %c0_94, %c0_95] : memref<9x1x256xf32, #tpu.memory_space<vmem>>, vector<1x1x256xf32>
    %168 = vector.shape_cast %167 : vector<1x1x256xf32> to vector<1x256xf32>
    %169 = vector.broadcast %168 : vector<1x256xf32> to vector<8x256xf32>
    %170 = arith.mulf %166, %169 : vector<8x256xf32>
    %c15 = arith.constant 15 : index
    %c0_96 = arith.constant 0 : index
    %c0_97 = arith.constant 0 : index
    %171 = vector.load %arg2[%c15, %c0_96, %c0_97] : memref<18x8x8xf32, #tpu.memory_space<vmem>>, vector<1x8x8xf32>
    %172 = vector.shape_cast %171 : vector<1x8x8xf32> to vector<8x8xf32>
    %cst_98 = arith.constant dense<0.000000e+00> : vector<8x256xf32>
    %173 = tpu.matmul %172, %170, %cst_98 {dimension_numbers = #tpu.dot_dimension_numbers<[1], [0], [0], [1], [0, 0, 1, 1], [], []>} : vector<8x8xf32>, vector<8x256xf32>, vector<8x256xf32> -> vector<8x256xf32>
    %174 = arith.addf %163, %173 : vector<8x256xf32>
    %175 = vector.extract_strided_slice %100 {offsets = [0, 16], sizes = [8, 240], strides = [1, 1]} : vector<8x256xf32> to vector<8x240xf32>
    %176 = vector.extract_strided_slice %100 {offsets = [0, 0], sizes = [8, 16], strides = [1, 1]} : vector<8x256xf32> to vector<8x16xf32>
    %177 = tpu.concatenate %175, %176 in 1 : vector<8x240xf32>, vector<8x16xf32> -> vector<8x256xf32>
    %c7_99 = arith.constant 7 : index
    %c0_100 = arith.constant 0 : index
    %c0_101 = arith.constant 0 : index
    %178 = vector.load %arg4[%c7_99, %c0_100, %c0_101] : memref<9x1x256xf32, #tpu.memory_space<vmem>>, vector<1x1x256xf32>
    %179 = vector.shape_cast %178 : vector<1x1x256xf32> to vector<1x256xf32>
    %180 = vector.broadcast %179 : vector<1x256xf32> to vector<8x256xf32>
    %181 = arith.mulf %177, %180 : vector<8x256xf32>
    %c16 = arith.constant 16 : index
    %c0_102 = arith.constant 0 : index
    %c0_103 = arith.constant 0 : index
    %182 = vector.load %arg2[%c16, %c0_102, %c0_103] : memref<18x8x8xf32, #tpu.memory_space<vmem>>, vector<1x8x8xf32>
    %183 = vector.shape_cast %182 : vector<1x8x8xf32> to vector<8x8xf32>
    %cst_104 = arith.constant dense<0.000000e+00> : vector<8x256xf32>
    %184 = tpu.matmul %183, %181, %cst_104 {dimension_numbers = #tpu.dot_dimension_numbers<[1], [0], [0], [1], [0, 0, 1, 1], [], []>} : vector<8x8xf32>, vector<8x256xf32>, vector<8x256xf32> -> vector<8x256xf32>
    %185 = arith.addf %174, %184 : vector<8x256xf32>
    %186 = vector.extract_strided_slice %100 {offsets = [0, 17], sizes = [8, 239], strides = [1, 1]} : vector<8x256xf32> to vector<8x239xf32>
    %187 = vector.extract_strided_slice %100 {offsets = [0, 0], sizes = [8, 17], strides = [1, 1]} : vector<8x256xf32> to vector<8x17xf32>
    %188 = tpu.concatenate %186, %187 in 1 : vector<8x239xf32>, vector<8x17xf32> -> vector<8x256xf32>
    %c8_105 = arith.constant 8 : index
    %c0_106 = arith.constant 0 : index
    %c0_107 = arith.constant 0 : index
    %189 = vector.load %arg4[%c8_105, %c0_106, %c0_107] : memref<9x1x256xf32, #tpu.memory_space<vmem>>, vector<1x1x256xf32>
    %190 = vector.shape_cast %189 : vector<1x1x256xf32> to vector<1x256xf32>
    %191 = vector.broadcast %190 : vector<1x256xf32> to vector<8x256xf32>
    %192 = arith.mulf %188, %191 : vector<8x256xf32>
    %c17 = arith.constant 17 : index
    %c0_108 = arith.constant 0 : index
    %c0_109 = arith.constant 0 : index
    %193 = vector.load %arg2[%c17, %c0_108, %c0_109] : memref<18x8x8xf32, #tpu.memory_space<vmem>>, vector<1x8x8xf32>
    %194 = vector.shape_cast %193 : vector<1x8x8xf32> to vector<8x8xf32>
    %cst_110 = arith.constant dense<0.000000e+00> : vector<8x256xf32>
    %195 = tpu.matmul %194, %192, %cst_110 {dimension_numbers = #tpu.dot_dimension_numbers<[1], [0], [0], [1], [0, 0, 1, 1], [], []>} : vector<8x8xf32>, vector<8x256xf32>, vector<8x256xf32> -> vector<8x256xf32>
    %196 = arith.addf %185, %195 : vector<8x256xf32>
    %c0_111 = arith.constant 0 : index
    %c0_112 = arith.constant 0 : index
    %197 = vector.load %arg1[%c0_111, %c0_112] : memref<8x256xf32, #tpu.memory_space<vmem>>, vector<8x256xf32>
    %198 = arith.addf %196, %197 : vector<8x256xf32>
    %c0_113 = arith.constant 0 : index
    %c0_114 = arith.constant 0 : index
    %199 = vector.load %arg5[%c0_113, %c0_114] : memref<8x256xf32, #tpu.memory_space<vmem>>, vector<8x256xf32>
    tpu.vector_store %arg5[%c0_113, %c0_114], %198 {strides = array<i32>} : memref<8x256xf32, #tpu.memory_space<vmem>>, vector<8x256xf32>,
    return
  }
  func.func @transform_0(%arg0: i32) -> (i32, i32) {
    %c0_i32 = arith.constant 0 : i32
    %c0_i32_0 = arith.constant 0 : i32
    return %arg0, %c0_i32 : i32, i32
  }
  func.func @transform_1(%arg0: i32) -> (i32, i32, i32) {
    %c0_i32 = arith.constant 0 : i32
    %c0_i32_0 = arith.constant 0 : i32
    %c0_i32_1 = arith.constant 0 : i32
    %c0_i32_2 = arith.constant 0 : i32
    return %c0_i32, %c0_i32_0, %c0_i32_1 : i32, i32, i32
  }
  func.func @transform_2(%arg0: i32) -> (i32, i32, i32) {
    %c0_i32 = arith.constant 0 : i32
    %c0_i32_0 = arith.constant 0 : i32
    %c0_i32_1 = arith.constant 0 : i32
    %c0_i32_2 = arith.constant 0 : i32
    return %c0_i32, %c0_i32_0, %c0_i32_1 : i32, i32, i32
  }
  func.func @transform_3(%arg0: i32) -> (i32, i32, i32) {
    %c0_i32 = arith.constant 0 : i32
    %c0_i32_0 = arith.constant 0 : i32
    %c0_i32_1 = arith.constant 0 : i32
    %c0_i32_2 = arith.constant 0 : i32
    return %c0_i32, %c0_i32_0, %c0_i32_1 : i32, i32, i32
  }
  func.func @transform_4(%arg0: i32) -> (i32, i32) {
    %c0_i32 = arith.constant 0 : i32
    %c0_i32_0 = arith.constant 0 : i32
    return %arg0, %c0_i32 : i32, i32
  }
}

</mosaic_0001>

<bundles_post_ra>
// kernel: tpu_custom_call.1
= control target key start
LH: loop header
LB: loop body
LE: loop exit
PB: predicated region body
PF: predicated region fallthrough
CT: control target
= control target key end

     0   :  { %s1865_s19 = smov 16   ;;  %s1866_s20 = smov 17   ;;  %v1867_v4 = vmov 0.0   ;;  %s2228_s0 = inlined_call_operand.vmem [shape: f32[8,256], index: 0, kind: input, shape index: {}]   ;;  %s2229_s1 = inlined_call_operand.vmem [shape: f32[18,8,8], index: 1, kind: input, shape index: {}]   ;;  %s2230_s2 = inlined_call_operand.vmem [shape: f32[2,8,1], index: 2, kind: input, shape index: {}]   ;;  %s2231_s3 = inlined_call_operand.vmem [shape: f32[9,1,256], index: 3, kind: input, shape index: {}]   ;;  %s2232_s4 = inlined_call_operand.hbm [shape: f32[8,256], index: 4, kind: output, shape index: {}]  }
   0x1   :  { %v1904_v0 = vld [vmem:[%s2228_s0 + $0x8] sm:$0xff]  ;;  %v1909_v1 = vld [vmem:[%s2228_s0] sm:$0xff]  ;;  %123 = vmatprep.mubr.f32.mxu0 %v1867_v4  ;;  %1022 = vmatprep.mubr.f32.mxu1 %v1867_v4 }
   0x2   :  { %v1912_v2 = vmax.f32 %v1904_v0, 0.0  ;;  %v1919_v3 = vmax.f32 %v1909_v1, 0.0 }
   0x4   :  { %132 = vrot.lane.b32.xlu1 %v1912_v2, %s1865_s19  ;;  %29 = vrot.lane.b32.xlu0 %v1912_v2, %s1866_s20 }
   0x5   :  { %9 = vsyncpa [#allocation3], 0  ;;  %s1868_s0 = smov 15   ;;  %s1869_s21 = smov 1   ;;  %v22_v5 = vld [vmem:[%s2230_s2] sm:$0xff]  ;;  %v1874_v6 = vmov 0   ;;  %v42_v7 = vlaneseq }
   0x6   :  { %s1870_s22 = smov 127   ;;  %s1871_s23 = smov 113   ;;  %1840 = vset.pattern.permute.xlu0 %v1874_v6  ;;  %v1751_v11 = vld [vmem:[%s2231_s3 + $0x2] sm:$0x3]  ;;  %v40_v12 = vld [vmem:[%s2231_s3] sm:$0x3] }
   0x7   :  { %s1872_s24 = smov 112   ;;  %s1873_s25 = smov 111   ;;  %v43_v8 = vshrl.u32 %v42_v7, 7  ;;  %vm137_vm0 = vcmask 130048   ;;  %vm35_vm1 = vcmask 138240   ;;  %vm240_vm2 = vcmask 121856  }
   0x8   :  { %135 = vrot.lane.b32.xlu1 %v1919_v3, %s1865_s19  ;;  %33 = vrot.lane.b32.xlu0 %v1919_v3, %s1866_s20  ;;  %v1754_v19 = vld [vmem:[%s2231_s3 + $0x4] sm:$0x3]  ;;  %vm55_vm3 = vcmask 64512   ;;  %v1757_v35 = vld [vmem:[%s2231_s3 + $0x6] sm:$0x3]  ;;  %vm343_vm4 = vcmask 7168  }
   0x9   :  { %v1954_v9 = vsub.s32 0, %v43_v8  ;;  %v1956_v10 = vsub.s32 1, %v43_v8  ;;  %v54_v31 = vld [vmem:[%s2229_s1] sm:$0xff]  ;;  %v1752_v44 = vld [vmem:[%s2229_s1 + $0x8] sm:$0xff]  ;;  %v1755_v49 = vld [vmem:[%s2229_s1 + $0x10] sm:$0xff]  ;;  %vm523_vm5 = vcmask 1039360  }
   0xa   :  { %v1762_v50 = vld [vmem:[%s2231_s3 + $0xa] sm:$0x3]  ;;  %v1758_v55 = vld [vmem:[%s2229_s1 + $0x18] sm:$0xff]  ;;  %v1765_v57 = vld [vmem:[%s2231_s3 + $0xc] sm:$0x3]  ;;  %vm626_vm6 = vcmask 924672  }
   0xb   :  { %v1965_v15 = vrot.slane %v1751_v11, %v1956_v10  ;;  %v1968_v16 = vrot.slane %v40_v12, %v1956_v10  ;;  %v1971_v17 = vrot.slane %v40_v12, %v1954_v9  ;;  %v1974_v18 = vrot.slane %v1751_v11, %v1954_v9  ;;  %v1768_v6 = vld [vmem:[%s2231_s3 + $0xe] sm:$0x3]  ;;  %s1875_s8 = smov [#allocation2]  }
   0xc   :  { %238 = vrot.lane.b32.xlu1 %v1919_v3, %s1868_s0  ;;  %235 = vrot.lane.b32.xlu0 %v1912_v2, %s1868_s0  ;;  %v1987_v29 = vrot.slane %v1754_v19, %v1956_v10  ;;  %v2000_v37 = vrot.slane %v1754_v19, %v1954_v9  ;;  %v2005_v40 = vrot.slane %v1757_v35, %v1956_v10  ;;  %vm729_vm7 = vcmask 916480   ;;  %s1742_s9 = sshll.u32 %s1875_s8, 4  ;;  %s1743_s9 = int_to_ptr.vmem [resolvable:$true] %s1742_s9 }
   0xd   :  { %v2015_v46 = vrot.slane %v1757_v35, %v1954_v9  ;;  %v2030_v53 = vrot.slane %v1762_v50, %v1956_v10  ;;  %v2043_v60 = vrot.slane %v1762_v50, %v1954_v9  ;;  %v2048_v62 = vrot.slane %v1765_v57, %v1956_v10  ;;  %v1769_v35 = vld [vmem:[%s2229_s1 + $0x38] sm:$0xff]  ;;  %s1841_s10 = scalar_lea.vmem %s1743_s9, 256  ;;  %p1846_p1 = scmp.lt.s32.totalorder %s1743_s9, %s1743_s9 }
   0xe   :  { %v2061_v11 = vrot.slane %v1765_v57, %v1954_v9  ;;  %vm832_vm8 = vcmask 908288   ;;  %p1842_p0 = scmp.ne.s32.totalorder %s1743_s9, %s1841_s10  ;;  %p1847_p2 = scmp.lt.s32.totalorder %s1841_s10, %s1841_s10 }
  0x10   :  { %341 = vrot.lane.b32.xlu1 %v1919_v3, %s1869_s21  ;;  %338 = vrot.lane.b32.xlu0 %v1912_v2, %s1869_s21  ;;  %p1848_p3 = por %p1847_p2, %p1846_p1 }
  0x12   :  { %p1849_p4 = pnand %p1848_p3, %p1842_p0 }
  0x14   :  { %521 = vrot.lane.b32.xlu1 %v1912_v2, %s1870_s22  ;;  %519 = vrot.lane.b32.xlu0 %v1919_v3, %s1870_s22 }
  0x18   :  { %624 = vrot.lane.b32.xlu1 %v1912_v2, %s1871_s23  ;;  %622 = vrot.lane.b32.xlu0 %v1919_v3, %s1871_s23 }
  0x1c   :  { %727 = vrot.lane.b32.xlu1 %v1912_v2, %s1872_s24  ;;  %725 = vrot.lane.b32.xlu0 %v1919_v3, %s1872_s24 }
  0x20   :  { %830 = vrot.lane.b32.xlu1 %v1912_v2, %s1873_s25  ;;  %828 = vrot.lane.b32.xlu0 %v1919_v3, %s1873_s25 }
  0x24   :  { %25 = vperm.xlu0 %1840, %v22_v5   ;;  %v1760_v5 = vld [vmem:[%s2229_s1 + $0x20] sm:$0xff] }
  0x76   :  { %v133_v13 = vpop.permute.xlu1 %132  ;;  %v30_v14 = vpop.permute.xlu0 %29 }
  0x7a   :  { %v136_v20 = vpop.permute.xlu1 %135  ;;  %v34_v21 = vpop.permute.xlu0 %33 }
  0x7b   :  { %v138_v22 = vsel %vm137_vm0, %v136_v20, %v133_v13  ;;  %v141_v23 = vsel %vm137_vm0, %v133_v13, %v136_v20  ;;  %v39_v24 = vsel %vm35_vm1, %v30_v14, %v34_v21  ;;  %v36_v25 = vsel %vm35_vm1, %v34_v21, %v30_v14  ;;  %v1763_v20 = vld [vmem:[%s2229_s1 + $0x28] sm:$0xff] }
  0x7c   :  { %v156_v26 = vmul.f32 %v1965_v15, %v138_v22  ;;  %v53_v27 = vmul.f32 %v1968_v16, %v36_v25  ;;  %v52_v28 = vmul.f32 %v1971_v17, %v39_v24  ;;  %v155_v30 = vmul.f32 %v1974_v18, %v141_v23  ;;  %v1771_v22 = vld [vmem:[%s2231_s3 + $0x10] sm:$0x3] }
  0x7d   :  { %v2066_v13 = vrot.slane %v1768_v6, %v1956_v10  ;;  %v2079_v25 = vrot.slane %v1768_v6, %v1954_v9 }
  0x7e   :  { %59 = vmatprep.subr.mxu0 %v53_v27  ;;  %v239_v32 = vpop.permute.xlu1 %238  ;;  %v236_v33 = vpop.permute.xlu0 %235  ;;  %v2084_v27 = vrot.slane %v1771_v22, %v1956_v10 }
  0x7f   :  { %60 = vmatpush1.msra.mxu0 %v52_v28  ;;  %v241_v34 = vsel %vm240_vm2, %v239_v32, %v236_v33  ;;  %v244_v38 = vsel %vm240_vm2, %v236_v33, %v239_v32  ;;  %v2094_v33 = vrot.slane %v1771_v22, %v1954_v9  ;;  %v1772_v9 = vld [vmem:[%s2229_s1 + $0x40] sm:$0xff] }
  0x80   :  { %1750 = vmatmul.mubr.msk.f32.vlgmr.msra.gmra.mrb[0].mxu0 %vm55_vm3, %v54_v31  ;;  %162 = vmatprep.subr.mxu0 %v156_v26  ;;  %v259_v36 = vmul.f32 %v1987_v29, %v241_v34  ;;  %v258_v43 = vmul.f32 %v2000_v37, %v244_v38  ;;  %v1766_v31 = vld [vmem:[%s2229_s1 + $0x30] sm:$0xff] }
  0x81   :  { %163 = vmatpush1.msra.mxu0 %v155_v30  ;;  %226 = vmatprep.mubr.f32.mxu0 %v1867_v4 }
  0x82   :  { %265 = vmatprep.subr.mxu0 %v259_v36  ;;  %v342_v39 = vpop.permute.xlu1 %341  ;;  %v339_v41 = vpop.permute.xlu0 %338 }
  0x83   :  { %v344_v42 = vsel %vm343_vm4, %v342_v39, %v339_v41  ;;  %v347_v47 = vsel %vm343_vm4, %v339_v41, %v342_v39 }
  0x84   :  { %v362_v45 = vmul.f32 %v2005_v40, %v344_v42  ;;  %v361_v48 = vmul.f32 %v2015_v46, %v347_v47 }
  0x86   :  { %v522_v51 = vpop.permute.xlu1 %521  ;;  %v520_v52 = vpop.permute.xlu0 %519 }
  0x87   :  { %v528_v54 = vsel %vm523_vm5, %v522_v51, %v520_v52  ;;  %v524_v61 = vsel %vm523_vm5, %v520_v52, %v522_v51 }
  0x88   :  { %1753 = vmatmul.mubr.msk.f32.vlgmr.msra.gmra.mrb[0].mxu0 %vm55_vm3, %v1752_v44  ;;  %v543_v56 = vmul.f32 %v2030_v53, %v528_v54 }
  0x89   :  { %266 = vmatpush1.msra.mxu0 %v258_v43  ;;  %329 = vmatprep.mubr.f32.mxu0 %v1867_v4 }
  0x8a   :  { %368 = vmatprep.subr.mxu0 %v362_v45  ;;  %v625_v58 = vpop.permute.xlu1 %624  ;;  %v623_v59 = vpop.permute.xlu0 %622  ;;  %v1774_v45 = vld [vmem:[%s2230_s2 + $0x8] sm:$0xff] }
  0x8b   :  { %v631_v63 = vsel %vm626_vm6, %v625_v58, %v623_v59  ;;  %v627_v12 = vsel %vm626_vm6, %v623_v59, %v625_v58 }
  0x8c   :  { %v645_v19 = vmul.f32 %v2061_v11, %v627_v12  ;;  %v1779_v12 = vld [vmem:[%s2229_s1 + $0x58] sm:$0xff] }
  0x8e   :  { %v728_v7 = vpop.permute.xlu1 %727  ;;  %v726_v8 = vpop.permute.xlu0 %725 }
  0x8f   :  { %v734_v14 = vsel %vm729_vm7, %v728_v7, %v726_v8  ;;  %v730_v26 = vsel %vm729_vm7, %v726_v8, %v728_v7 }
  0x90   :  { %1756 = vmatmul.mubr.msk.f32.vlgmr.msra.gmra.mrb[0].mxu0 %vm55_vm3, %v1755_v49  ;;  %v749_v21 = vmul.f32 %v2066_v13, %v734_v14  ;;  %v748_v30 = vmul.f32 %v2079_v25, %v730_v26  ;;  %v1783_v26 = vld [vmem:[%s2229_s1 + $0x68] sm:$0xff] }
  0x91   :  { %369 = vmatpush1.msra.mxu0 %v361_v48  ;;  %432 = vmatprep.mubr.f32.mxu0 %v1867_v4 }
  0x92   :  { %446 = vmatprep.subr.mxu0 %v1912_v2  ;;  %v542_v2 = vmul.f32 %v2043_v60, %v524_v61  ;;  %v831_v23 = vpop.permute.xlu1 %830  ;;  %v829_v24 = vpop.permute.xlu0 %828 }
  0x93   :  { %v837_v28 = vsel %vm832_vm8, %v831_v23, %v829_v24  ;;  %v833_v10 = vsel %vm832_vm8, %v829_v24, %v831_v23 }
  0x94   :  { %v852_v32 = vmul.f32 %v2084_v27, %v837_v28  ;;  %v851_v34 = vmul.f32 %v2094_v33, %v833_v10 }
  0x98   :  { %1759 = vmatmul.mubr.msk.f32.vlgmr.msra.gmra.mrb[0].mxu0 %vm55_vm3, %v1758_v55  ;;  %v1775_v55 = vld [vmem:[%s2229_s1 + $0x48] sm:$0xff] }
  0x99   :  { %447 = vmatpush1.msra.mxu0 %v1919_v3  ;;  %510 = vmatprep.mubr.f32.mxu0 %v1867_v4  ;;  %v646_v3 = vmul.f32 %v2048_v62, %v631_v63 }
  0x9a   :  { %549 = vmatprep.subr.mxu0 %v543_v56 }
  0xa0   :  { %1761 = vmatmul.mubr.msk.f32.vlgmr.msra.gmra.mrb[0].mxu0 %vm55_vm3, %v1760_v5 }
  0xa1   :  { %550 = vmatpush1.msra.mxu0 %v542_v2  ;;  %613 = vmatprep.mubr.f32.mxu0 %v1867_v4 }
  0xa2   :  { %652 = vmatprep.subr.mxu0 %v646_v3  ;;  %v1777_v3 = vld [vmem:[%s2229_s1 + $0x50] sm:$0xff] }
  0xa3   :  { %v26_v36 = vpop.permute.xlu0 %25 }
  0xa8   :  { %1764 = vmatmul.mubr.msk.f32.vlgmr.msra.gmra.mrb[0].mxu0 %vm55_vm3, %v1763_v20  ;;  %v1781_v20 = vld [vmem:[%s2229_s1 + $0x60] sm:$0xff] }
  0xa9   :  { %653 = vmatpush1.msra.mxu0 %v645_v19  ;;  %716 = vmatprep.mubr.f32.mxu0 %v1867_v4 }
  0xaa   :  { %755 = vmatprep.subr.mxu0 %v749_v21 }
  0xb0   :  { %1767 = vmatmul.mubr.msk.f32.vlgmr.msra.gmra.mrb[0].mxu0 %vm55_vm3, %v1766_v31 }
  0xb1   :  { %756 = vmatpush1.msra.mxu0 %v748_v30  ;;  %819 = vmatprep.mubr.f32.mxu0 %v1867_v4 }
  0xb2   :  { %858 = vmatprep.subr.mxu0 %v852_v32 }
  0xb8   :  { %1770 = vmatmul.mubr.msk.f32.vlgmr.msra.gmra.mrb[0].mxu0 %vm55_vm3, %v1769_v35 }
  0xb9   :  { %859 = vmatpush1.msra.mxu0 %v851_v34  ;;  %922 = vmatprep.mubr.f32.mxu0 %v1867_v4  ;;  %v1785_v34 = vld [vmem:[%s2229_s1 + $0x70] sm:$0xff] }
  0xc0   :  { %1773 = vmatmul.mubr.msk.f32.vlgmr.msra.gmra.mrb[0].mxu0 %vm55_vm3, %v1772_v9 }
 0x193   :  { %v924_v38 = vpop.f32.mrb[0].mxu0 }
 0x194   :  { %v926_v39 = vpop.f32.mrb[1].mxu0  ;;  %v1793_v42 = vadd.f32 %v924_v38, %v26_v36 }
 0x195   :  { %v1794_v41 = vadd.f32 %v926_v39, %v26_v36  ;;  %v1787_v39 = vld [vmem:[%s2229_s1 + $0x78] sm:$0xff] }
 0x196   :  { %v2110_v44 = vmax.f32 %v1793_v42, 0.0  ;;  %v1789_v42 = vld [vmem:[%s2229_s1 + $0x80] sm:$0xff] }
 0x197   :  { %v932_v43 = vmax.f32 %v1794_v41, 0.0 }
 0x199   :  { %1031 = vrot.lane.b32.xlu0 %v932_v43, %s1865_s19  ;;  %941 = vrot.lane.b32.xlu1 %v932_v43, %s1866_s20 }
 0x19d   :  { %1120 = vrot.lane.b32.xlu0 %v932_v43, %s1868_s0  ;;  %945 = vrot.lane.b32.xlu1 %v2110_v44, %s1866_s20 }
 0x1a1   :  { %1209 = vrot.lane.b32.xlu0 %v932_v43, %s1869_s21  ;;  %1034 = vrot.lane.b32.xlu1 %v2110_v44, %s1865_s19 }
 0x1a5   :  { %1376 = vrot.lane.b32.xlu0 %v2110_v44, %s1870_s22  ;;  %1123 = vrot.lane.b32.xlu1 %v2110_v44, %s1868_s0 }
 0x1a9   :  { %1465 = vrot.lane.b32.xlu0 %v2110_v44, %s1871_s23  ;;  %1212 = vrot.lane.b32.xlu1 %v2110_v44, %s1869_s21 }
 0x1ad   :  { %1554 = vrot.lane.b32.xlu0 %v2110_v44, %s1872_s24  ;;  %1378 = vrot.lane.b32.xlu1 %v932_v43, %s1870_s22 }
 0x1b1   :  { %1643 = vrot.lane.b32.xlu0 %v2110_v44, %s1873_s25  ;;  %1467 = vrot.lane.b32.xlu1 %v932_v43, %s1871_s23 }
 0x1b5   :  { %937 = vperm.xlu0 %1840, %v1774_v45   ;;  %1556 = vrot.lane.b32.xlu1 %v932_v43, %s1872_s24 }
 0x1b9   :  { %1645 = vrot.lane.b32.xlu1 %v932_v43, %s1873_s25 }
 0x20b   :  { %v942_v47 = vpop.permute.xlu1 %941  ;;  %v1032_v48 = vpop.permute.xlu0 %1031 }
 0x20f   :  { %v946_v49 = vpop.permute.xlu1 %945  ;;  %v1121_v59 = vpop.permute.xlu0 %1120 }
 0x210   :  { %v950_v50 = vsel %vm35_vm1, %v942_v47, %v946_v49  ;;  %v947_v51 = vsel %vm35_vm1, %v946_v49, %v942_v47 }
 0x211   :  { %v952_v52 = vmul.f32 %v947_v51, %v1968_v16  ;;  %v951_v54 = vmul.f32 %v950_v50, %v1971_v17 }
 0x213   :  { %958 = vmatprep.subr.mxu1 %v952_v52  ;;  %v1035_v56 = vpop.permute.xlu1 %1034 }
 0x214   :  { %v1036_v57 = vsel %vm137_vm0, %v1035_v56, %v1032_v48  ;;  %v1039_v58 = vsel %vm137_vm0, %v1032_v48, %v1035_v56  ;;  %959 = vmatpush1.msra.mxu1 %v951_v54 }
 0x215   :  { %v1040_v61 = vmul.f32 %v1039_v58, %v1974_v18  ;;  %v1041_v63 = vmul.f32 %v1036_v57, %v1965_v15  ;;  %1776 = vmatmul.mubr.msk.f32.vlgmr.msra.gmra.mrb[0].mxu1 %vm55_vm3, %v1775_v55  ;;  %v1210_v18 = vpop.permute.xlu0 %1209 }
 0x216   :  { %1111 = vmatprep.mubr.f32.mxu1 %v1867_v4 }
 0x217   :  { %1047 = vmatprep.subr.mxu1 %v1041_v63  ;;  %v1124_v16 = vpop.permute.xlu1 %1123 }
 0x218   :  { %v1125_v17 = vsel %vm240_vm2, %v1124_v16, %v1121_v59  ;;  %1048 = vmatpush1.msra.mxu1 %v1040_v61  ;;  %v1128_v2 = vsel %vm240_vm2, %v1121_v59, %v1124_v16 }
 0x219   :  { %v1130_v5 = vmul.f32 %v1125_v17, %v1987_v29  ;;  %v1129_v6 = vmul.f32 %v1128_v2, %v2000_v37 }
 0x21b   :  { %1136 = vmatprep.subr.mxu1 %v1130_v5  ;;  %v1213_v15 = vpop.permute.xlu1 %1212 }
 0x21c   :  { %v1214_v7 = vsel %vm343_vm4, %v1213_v15, %v1210_v18  ;;  %v1217_v29 = vsel %vm343_vm4, %v1210_v18, %v1213_v15 }
 0x21d   :  { %v1219_v8 = vmul.f32 %v1214_v7, %v2005_v40  ;;  %1778 = vmatmul.mubr.msk.f32.vlgmr.msra.gmra.mrb[0].mxu1 %vm55_vm3, %v1777_v3  ;;  %v1218_v14 = vmul.f32 %v1217_v29, %v2015_v46  ;;  %v1377_v40 = vpop.permute.xlu0 %1376 }
 0x21e   :  { %1137 = vmatpush1.msra.mxu1 %v1129_v6  ;;  %1200 = vmatprep.mubr.f32.mxu1 %v1867_v4 }
 0x21f   :  { %1225 = vmatprep.subr.mxu1 %v1219_v8  ;;  %v1379_v37 = vpop.permute.xlu1 %1378 }
 0x220   :  { %v1384_v19 = vsel %vm523_vm5, %v1379_v37, %v1377_v40  ;;  %v1380_v23 = vsel %vm523_vm5, %v1377_v40, %v1379_v37 }
 0x221   :  { %v1386_v21 = vmul.f32 %v1384_v19, %v2030_v53  ;;  %v1466_v22 = vpop.permute.xlu0 %1465  ;;  %v1385_v28 = vmul.f32 %v1380_v23, %v2043_v60 }
 0x223   :  { %v1468_v46 = vpop.permute.xlu1 %1467 }
 0x224   :  { %v1473_v24 = vsel %vm626_vm6, %v1468_v46, %v1466_v22  ;;  %v1469_v32 = vsel %vm626_vm6, %v1466_v22, %v1468_v46 }
 0x225   :  { %1780 = vmatmul.mubr.msk.f32.vlgmr.msra.gmra.mrb[0].mxu1 %vm55_vm3, %v1779_v12  ;;  %v1475_v53 = vmul.f32 %v1473_v24, %v2048_v62  ;;  %v1555_v31 = vpop.permute.xlu0 %1554  ;;  %v1474_v60 = vmul.f32 %v1469_v32, %v2061_v11 }
 0x226   :  { %1226 = vmatpush1.msra.mxu1 %v1218_v14  ;;  %1289 = vmatprep.mubr.f32.mxu1 %v1867_v4 }
 0x227   :  { %1303 = vmatprep.subr.mxu1 %v932_v43  ;;  %v1557_v30 = vpop.permute.xlu1 %1556 }
 0x228   :  { %v1562_v10 = vsel %vm729_vm7, %v1557_v30, %v1555_v31  ;;  %v1558_v36 = vsel %vm729_vm7, %v1555_v31, %v1557_v30 }
 0x229   :  { %v1564_v62 = vmul.f32 %v1562_v10, %v2066_v13  ;;  %v1644_v9 = vpop.permute.xlu0 %1643  ;;  %v1563_v11 = vmul.f32 %v1558_v36, %v2079_v25  ;;  %v1791_v25 = vld [vmem:[%s2229_s1 + $0x88] sm:$0xff] }
 0x22b   :  { %v1646_v35 = vpop.permute.xlu1 %1645 }
 0x22c   :  { %v1651_v38 = vsel %vm832_vm8, %v1646_v35, %v1644_v9  ;;  %v1647_v41 = vsel %vm832_vm8, %v1644_v9, %v1646_v35 }
 0x22d   :  { %1782 = vmatmul.mubr.msk.f32.vlgmr.msra.gmra.mrb[0].mxu1 %vm55_vm3, %v1781_v20  ;;  %v1653_v13 = vmul.f32 %v1651_v38, %v2084_v27  ;;  %v1652_v43 = vmul.f32 %v1647_v41, %v2094_v33 }
 0x22e   :  { %1304 = vmatpush1.msra.mxu1 %v2110_v44  ;;  %1367 = vmatprep.mubr.f32.mxu1 %v1867_v4 }
 0x22f   :  { %1392 = vmatprep.subr.mxu1 %v1386_v21 }
 0x234   :  { %v938_v27 = vpop.permute.xlu0 %937 }
 0x235   :  { %1784 = vmatmul.mubr.msk.f32.vlgmr.msra.gmra.mrb[0].mxu1 %vm55_vm3, %v1783_v26 }
 0x236   :  { %1393 = vmatpush1.msra.mxu1 %v1385_v28  ;;  %1456 = vmatprep.mubr.f32.mxu1 %v1867_v4 }
 0x237   :  { %1481 = vmatprep.subr.mxu1 %v1475_v53 }
 0x23d   :  { %1786 = vmatmul.mubr.msk.f32.vlgmr.msra.gmra.mrb[0].mxu1 %vm55_vm3, %v1785_v34 }
 0x23e   :  { %1482 = vmatpush1.msra.mxu1 %v1474_v60  ;;  %1545 = vmatprep.mubr.f32.mxu1 %v1867_v4 }
 0x23f   :  { %1570 = vmatprep.subr.mxu1 %v1564_v62 }
 0x245   :  { %1788 = vmatmul.mubr.msk.f32.vlgmr.msra.gmra.mrb[0].mxu1 %vm55_vm3, %v1787_v39 }
 0x246   :  { %1571 = vmatpush1.msra.mxu1 %v1563_v11  ;;  %1634 = vmatprep.mubr.f32.mxu1 %v1867_v4 }
 0x247   :  { %1659 = vmatprep.subr.mxu1 %v1653_v13 }
 0x24d   :  { %1790 = vmatmul.mubr.msk.f32.vlgmr.msra.gmra.mrb[0].mxu1 %vm55_vm3, %v1789_v42 }
 0x24e   :  { %1660 = vmatpush1.msra.mxu1 %v1652_v43  ;;  %1723 = vmatprep.mubr.f32.mxu1 %v1867_v4 }
 0x255   :  { %1792 = vmatmul.mubr.msk.f32.vlgmr.msra.gmra.mrb[0].mxu1 %vm55_vm3, %v1791_v25 }
 0x328   :  { %v1725_v44 = vpop.f32.mrb[0].mxu1 }
 0x329   :  { %v1795_v45 = vadd.f32 %v1725_v44, %v938_v27  ;;  %v1727_v47 = vpop.f32.mrb[1].mxu1 }
 0x32a   :  { %v1796_v48 = vadd.f32 %v1727_v47, %v938_v27 }
 0x32b   :  { %v1732_v33 = vadd.f32 %v1795_v45, %v1909_v1 }
 0x32c   :  { %v1733_v49 = vadd.f32 %v1796_v48, %v1904_v0 }
 0x32d   :  { %1734 = vst [vmem:[#allocation2] sm:$0xff] %v1732_v33 }
 0x32e   :  { %1735 = vst [vmem:[#allocation2 + $0x8] sm:$0xff] %v1733_v49 }
 0x32f   :  { %1852 = shalt.err (!%p1849_p4)
}
 0x330   :  { %s1853_s11 = scalar_lea.hbm %s2232_s4, 256 }
 0x331   :  { %p1854_p5 = scmp.ne.s32.totalorder %s2232_s4, %s1853_s11  ;;  %p1857_p6 = scmp.lt.u32.totalorder %s1853_s11, %s2232_s4 }
 0x333   :  { %p1859_p7 = pnand %p1857_p6, %p1854_p5 }
 0x335   :  { %1862 = shalt.err (!%p1859_p7)
}
 0x336   :  { %1745 = dma.vmem_to_hbm [thread:$0]  %s1743_s9, 256, %s2232_s4, [#allocation3]  }
 0x337   :  { %1863 = dma.done.wait [#allocation3], 256  }
 0x338   :  { %1864 = vsyncadd [#allocation3], 4294967040 }
 0x339   :  { %1749 = vsyncpa [#allocation3], 1 }

</bundles_post_ra>
